<compile_context>
chip_gen: v6e
topology: v6e:2x2x1
jax: 0.10.0
libtpu: 0.0.40
codegen_flags: <defaults>
</compile_context>

<pallas_src>
import jax
import jax.numpy as jnp
from jax.experimental import pallas as pl
from jax.experimental.pallas import tpu as pltpu

LANE = 128      # TPU vreg lane width
SUBLANE = 8     # f32 sublane count
NEG_SLOPE = 0.01  # torch.nn.functional.leaky_relu default


def _leaky_relu(v):
    return jnp.where(v > 0, v, NEG_SLOPE * v)


def qnetwork_kernel(x_ref,
                    w1_ref, b1_ref,
                    w2_ref, b2_ref,
                    w3_ref, b3_ref,
                    w4_ref, b4_ref,
                    o_ref):
    # Hoist bias loads (f32, shape (1, fout)); reused by the adds below.
    b1 = b1_ref[...]
    b2 = b2_ref[...]
    b3 = b3_ref[...]
    b4 = b4_ref[...]

    # MXU matmuls in bf16 with f32 accumulation; elementwise math in f32.
    h = jnp.dot(x_ref[...], w1_ref[...], preferred_element_type=jnp.float32) + b1
    h = _leaky_relu(h)

    h = jnp.dot(h.astype(jnp.bfloat16), w2_ref[...],
                preferred_element_type=jnp.float32) + b2
    h = _leaky_relu(h)

    h = jnp.dot(h.astype(jnp.bfloat16), w3_ref[...],
                preferred_element_type=jnp.float32) + b3
    h = _leaky_relu(h)

    h = jnp.dot(h.astype(jnp.bfloat16), w4_ref[...],
                preferred_element_type=jnp.float32) + b4

    o_ref[...] = h.astype(o_ref.dtype)


def init_params(key, l1, l2, l3, l4, l5):
    """Deterministic, PyTorch-Linear-style uniform init (f32 master params).

    Weights are stored [in_features, out_features] (transpose of torch
    Linear.weight) so the kernel computes y = x @ W + b directly.
    """
    dims = [(l1, l2), (l2, l3), (l3, l4), (l4, l5)]
    params = {}
    for i, (fin, fout) in enumerate(dims, start=1):
        key, kw, kb = jax.random.split(key, 3)
        bound = 1.0 / jnp.sqrt(float(fin))
        params[f"w{i}"] = jax.random.uniform(
            kw, (fin, fout), jnp.float32, minval=-bound, maxval=bound)
        params[f"b{i}"] = jax.random.uniform(
            kb, (1, fout), jnp.float32, minval=-bound, maxval=bound)
    return params


def pack_params(params):
    """Cast weights to bf16 for the MXU and pad the final layer to a
    lane-dense (multiple-of-128) output width. Biases stay f32."""
    l5 = params["w4"].shape[1]
    n_pad = max(LANE, pl.cdiv(l5, LANE) * LANE)
    packed = {}
    for i in (1, 2, 3):
        packed[f"w{i}"] = params[f"w{i}"].astype(jnp.bfloat16)
        packed[f"b{i}"] = params[f"b{i}"].astype(jnp.float32)
    packed["w4"] = jnp.pad(
        params["w4"], ((0, 0), (0, n_pad - l5))).astype(jnp.bfloat16)
    packed["b4"] = jnp.pad(
        params["b4"], ((0, 0), (0, n_pad - l5))).astype(jnp.float32)
    return packed


def qnetwork_forward(x, packed, out_features, tile_b=512):
    """x: [B, l1] float32. packed: output of pack_params. Returns [B, l5] f32."""
    B, l1 = x.shape
    w1, b1 = packed["w1"], packed["b1"]
    w2, b2 = packed["w2"], packed["b2"]
    w3, b3 = packed["w3"], packed["b3"]
    w4, b4 = packed["w4"], packed["b4"]
    n_pad = w4.shape[1]

    # Batch tile: multiple of the f32 sublane (8), capped by the padded batch.
    tile_b = max(SUBLANE, min(tile_b, pl.cdiv(B, SUBLANE) * SUBLANE))
    tile_b = pl.cdiv(tile_b, SUBLANE) * SUBLANE
    b_pad = pl.cdiv(B, tile_b) * tile_b
    grid = (b_pad // tile_b,)

    x_bf = x.astype(jnp.bfloat16)
    if b_pad != B:
        x_bf = jnp.pad(x_bf, ((0, b_pad - B), (0, 0)))

    vmem = pltpu.MemorySpace.VMEM

    def resident(a):  # whole array, VMEM-resident across every grid step
        return pl.BlockSpec(a.shape, lambda i: (0, 0), memory_space=vmem)

    flops = 2 * b_pad * (w1.shape[0] * w1.shape[1]
                         + w2.shape[0] * w2.shape[1]
                         + w3.shape[0] * w3.shape[1]
                         + w4.shape[0] * w4.shape[1])
    bytes_accessed = (x_bf.size * 2
                      + sum(packed[f"w{i}"].size for i in (1, 2, 3, 4)) * 2
                      + sum(packed[f"b{i}"].size for i in (1, 2, 3, 4)) * 4
                      + b_pad * n_pad * 4)

    out = pl.pallas_call(
        qnetwork_kernel,
        out_shape=jax.ShapeDtypeStruct((b_pad, n_pad), jnp.float32),
        grid=grid,
        in_specs=[pl.BlockSpec((tile_b, l1), lambda i: (i, 0), memory_space=vmem),
                  resident(w1), resident(b1),
                  resident(w2), resident(b2),
                  resident(w3), resident(b3),
                  resident(w4), resident(b4)],
        out_specs=pl.BlockSpec((tile_b, n_pad), lambda i: (i, 0),
                               memory_space=vmem),
        compiler_params=pltpu.CompilerParams(
            dimension_semantics=("parallel",)),
        cost_estimate=pl.CostEstimate(flops=flops, transcendentals=0,
                                      bytes_accessed=bytes_accessed),
    )(x_bf, w1, b1, w2, b2, w3, b3, w4, b4)

    return out[:B, :out_features]


def reference_forward(x, packed, out_features):
    """Pure-JAX reference mirroring the kernel's numerics (bf16 dots, f32 acc)."""
    h = jnp.dot(x.astype(jnp.bfloat16), packed["w1"],
                preferred_element_type=jnp.float32) + packed["b1"]
    h = jnp.where(h > 0, h, NEG_SLOPE * h)
    h = jnp.dot(h.astype(jnp.bfloat16), packed["w2"],
                preferred_element_type=jnp.float32) + packed["b2"]
    h = jnp.where(h > 0, h, NEG_SLOPE * h)
    h = jnp.dot(h.astype(jnp.bfloat16), packed["w3"],
                preferred_element_type=jnp.float32) + packed["b3"]
    h = jnp.where(h > 0, h, NEG_SLOPE * h)
    h = jnp.dot(h.astype(jnp.bfloat16), packed["w4"],
                preferred_element_type=jnp.float32) + packed["b4"]
    return h[:, :out_features]


if __name__ == "__main__":
    # Small shapes consistent with the module: QNetwork(l1=16, l2=32, l3=32, l4=32, l5=4)
    l1, l2, l3, l4, l5 = 16, 32, 32, 32, 4
    batch = 8

    key = jax.random.PRNGKey(0)
    key, kx = jax.random.split(key)
    x = jax.random.normal(kx, (batch, l1), jnp.float32)
    params = init_params(key, l1, l2, l3, l4, l5)
    packed = pack_params(params)

    out = qnetwork_forward(x, packed, out_features=l5)
    out = jax.block_until_ready(out)

    ref = reference_forward(x, packed, out_features=l5)
    assert out.shape == (batch, l5), out.shape
    assert jnp.allclose(out, ref, atol=1e-4, rtol=1e-4), "mismatch vs reference"

    print("KERNEL_OK")
</pallas_src>

<mosaic_0001>
module attributes {stable_mosaic.version = 11 : i64} {
  func.func @qnetwork_kernel(%arg0: i32, %arg1: memref<8x16xbf16, #tpu.memory_space<vmem>>, %arg2: memref<16x32xbf16, #tpu.memory_space<vmem>>, %arg3: memref<1x32xf32, #tpu.memory_space<vmem>>, %arg4: memref<32x32xbf16, #tpu.memory_space<vmem>>, %arg5: memref<1x32xf32, #tpu.memory_space<vmem>>, %arg6: memref<32x32xbf16, #tpu.memory_space<vmem>>, %arg7: memref<1x32xf32, #tpu.memory_space<vmem>>, %arg8: memref<32x128xbf16, #tpu.memory_space<vmem>>, %arg9: memref<1x128xf32, #tpu.memory_space<vmem>>, %arg10: memref<8x128xf32, #tpu.memory_space<vmem>>) attributes {dimension_semantics = [#tpu.dimension_semantics<parallel>], iteration_bounds = array<i64: 1>, scalar_prefetch = 0 : i64, scratch_operands = 0 : i64, tpu.core_type = #tpu.core_type<tc>, window_params = [{transform_indices = @transform_0, window_bounds = array<i64: 8, 16>}, {pipeline_mode = #tpu.pipeline_mode<synchronous>, transform_indices = @transform_1, window_bounds = array<i64: 16, 32>}, {pipeline_mode = #tpu.pipeline_mode<synchronous>, transform_indices = @transform_2, window_bounds = array<i64: 1, 32>}, {pipeline_mode = #tpu.pipeline_mode<synchronous>, transform_indices = @transform_3, window_bounds = array<i64: 32, 32>}, {pipeline_mode = #tpu.pipeline_mode<synchronous>, transform_indices = @transform_4, window_bounds = array<i64: 1, 32>}, {pipeline_mode = #tpu.pipeline_mode<synchronous>, transform_indices = @transform_5, window_bounds = array<i64: 32, 32>}, {pipeline_mode = #tpu.pipeline_mode<synchronous>, transform_indices = @transform_6, window_bounds = array<i64: 1, 32>}, {pipeline_mode = #tpu.pipeline_mode<synchronous>, transform_indices = @transform_7, window_bounds = array<i64: 32, 128>}, {pipeline_mode = #tpu.pipeline_mode<synchronous>, transform_indices = @transform_8, window_bounds = array<i64: 1, 128>}, {transform_indices = @transform_9, window_bounds = array<i64: 8, 128>}]} {
    %c0 = arith.constant 0 : index
    %c0_0 = arith.constant 0 : index
    %0 = vector.load %arg3[%c0, %c0_0] : memref<1x32xf32, #tpu.memory_space<vmem>>, vector<1x32xf32>
    %c0_1 = arith.constant 0 : index
    %c0_2 = arith.constant 0 : index
    %1 = vector.load %arg5[%c0_1, %c0_2] : memref<1x32xf32, #tpu.memory_space<vmem>>, vector<1x32xf32>
    %c0_3 = arith.constant 0 : index
    %c0_4 = arith.constant 0 : index
    %2 = vector.load %arg7[%c0_3, %c0_4] : memref<1x32xf32, #tpu.memory_space<vmem>>, vector<1x32xf32>
    %c0_5 = arith.constant 0 : index
    %c0_6 = arith.constant 0 : index
    %3 = vector.load %arg9[%c0_5, %c0_6] : memref<1x128xf32, #tpu.memory_space<vmem>>, vector<1x128xf32>
    %c0_7 = arith.constant 0 : index
    %c0_8 = arith.constant 0 : index
    %4 = vector.load %arg1[%c0_7, %c0_8] : memref<8x16xbf16, #tpu.memory_space<vmem>>, vector<8x16xbf16>
    %c0_9 = arith.constant 0 : index
    %c0_10 = arith.constant 0 : index
    %5 = vector.load %arg2[%c0_9, %c0_10] : memref<16x32xbf16, #tpu.memory_space<vmem>>, vector<16x32xbf16>
    %cst = arith.constant dense<0.000000e+00> : vector<8x32xf32>
    %6 = tpu.matmul %4, %5, %cst {dimension_numbers = #tpu.dot_dimension_numbers<[1], [0], [0], [1], [0, 0, 1, 1], [], []>} : vector<8x16xbf16>, vector<16x32xbf16>, vector<8x32xf32> -> vector<8x32xf32>
    %7 = vector.broadcast %0 : vector<1x32xf32> to vector<8x32xf32>
    %8 = arith.addf %6, %7 : vector<8x32xf32>
    %cst_11 = arith.constant 0.000000e+00 : f32
    %9 = vector.broadcast %cst_11 : f32 to vector<8x32xf32>
    %10 = arith.cmpf ogt, %8, %9 : vector<8x32xf32>
    %cst_12 = arith.constant 0.00999999977 : f32
    %11 = vector.broadcast %cst_12 : f32 to vector<8x32xf32>
    %12 = arith.mulf %11, %8 : vector<8x32xf32>
    %13 = arith.select %10, %8, %12 : vector<8x32xi1>, vector<8x32xf32>
    %14 = arith.truncf %13 : vector<8x32xf32> to vector<8x32xbf16>
    %c0_13 = arith.constant 0 : index
    %c0_14 = arith.constant 0 : index
    %15 = vector.load %arg4[%c0_13, %c0_14] : memref<32x32xbf16, #tpu.memory_space<vmem>>, vector<32x32xbf16>
    %cst_15 = arith.constant dense<0.000000e+00> : vector<8x32xf32>
    %16 = tpu.matmul %14, %15, %cst_15 {dimension_numbers = #tpu.dot_dimension_numbers<[1], [0], [0], [1], [0, 0, 1, 1], [], []>} : vector<8x32xbf16>, vector<32x32xbf16>, vector<8x32xf32> -> vector<8x32xf32>
    %17 = vector.broadcast %1 : vector<1x32xf32> to vector<8x32xf32>
    %18 = arith.addf %16, %17 : vector<8x32xf32>
    %cst_16 = arith.constant 0.000000e+00 : f32
    %19 = vector.broadcast %cst_16 : f32 to vector<8x32xf32>
    %20 = arith.cmpf ogt, %18, %19 : vector<8x32xf32>
    %cst_17 = arith.constant 0.00999999977 : f32
    %21 = vector.broadcast %cst_17 : f32 to vector<8x32xf32>
    %22 = arith.mulf %21, %18 : vector<8x32xf32>
    %23 = arith.select %20, %18, %22 : vector<8x32xi1>, vector<8x32xf32>
    %24 = arith.truncf %23 : vector<8x32xf32> to vector<8x32xbf16>
    %c0_18 = arith.constant 0 : index
    %c0_19 = arith.constant 0 : index
    %25 = vector.load %arg6[%c0_18, %c0_19] : memref<32x32xbf16, #tpu.memory_space<vmem>>, vector<32x32xbf16>
    %cst_20 = arith.constant dense<0.000000e+00> : vector<8x32xf32>
    %26 = tpu.matmul %24, %25, %cst_20 {dimension_numbers = #tpu.dot_dimension_numbers<[1], [0], [0], [1], [0, 0, 1, 1], [], []>} : vector<8x32xbf16>, vector<32x32xbf16>, vector<8x32xf32> -> vector<8x32xf32>
    %27 = vector.broadcast %2 : vector<1x32xf32> to vector<8x32xf32>
    %28 = arith.addf %26, %27 : vector<8x32xf32>
    %cst_21 = arith.constant 0.000000e+00 : f32
    %29 = vector.broadcast %cst_21 : f32 to vector<8x32xf32>
    %30 = arith.cmpf ogt, %28, %29 : vector<8x32xf32>
    %cst_22 = arith.constant 0.00999999977 : f32
    %31 = vector.broadcast %cst_22 : f32 to vector<8x32xf32>
    %32 = arith.mulf %31, %28 : vector<8x32xf32>
    %33 = arith.select %30, %28, %32 : vector<8x32xi1>, vector<8x32xf32>
    %34 = arith.truncf %33 : vector<8x32xf32> to vector<8x32xbf16>
    %c0_23 = arith.constant 0 : index
    %c0_24 = arith.constant 0 : index
    %35 = vector.load %arg8[%c0_23, %c0_24] : memref<32x128xbf16, #tpu.memory_space<vmem>>, vector<32x128xbf16>
    %cst_25 = arith.constant dense<0.000000e+00> : vector<8x128xf32>
    %36 = tpu.matmul %34, %35, %cst_25 {dimension_numbers = #tpu.dot_dimension_numbers<[1], [0], [0], [1], [0, 0, 1, 1], [], []>} : vector<8x32xbf16>, vector<32x128xbf16>, vector<8x128xf32> -> vector<8x128xf32>
    %37 = vector.broadcast %3 : vector<1x128xf32> to vector<8x128xf32>
    %38 = arith.addf %36, %37 : vector<8x128xf32>
    %c0_26 = arith.constant 0 : index
    %c0_27 = arith.constant 0 : index
    %39 = vector.load %arg10[%c0_26, %c0_27] : memref<8x128xf32, #tpu.memory_space<vmem>>, vector<8x128xf32>
    tpu.vector_store %arg10[%c0_26, %c0_27], %38 {strides = array<i32>} : memref<8x128xf32, #tpu.memory_space<vmem>>, vector<8x128xf32>,
    return
  }
  func.func @transform_0(%arg0: i32) -> (i32, i32) {
    %c0_i32 = arith.constant 0 : i32
    %c0_i32_0 = arith.constant 0 : i32
    return %arg0, %c0_i32 : i32, i32
  }
  func.func @transform_1(%arg0: i32) -> (i32, i32) {
    %c0_i32 = arith.constant 0 : i32
    %c0_i32_0 = arith.constant 0 : i32
    %c0_i32_1 = arith.constant 0 : i32
    return %c0_i32, %c0_i32_0 : i32, i32
  }
  func.func @transform_2(%arg0: i32) -> (i32, i32) {
    %c0_i32 = arith.constant 0 : i32
    %c0_i32_0 = arith.constant 0 : i32
    %c0_i32_1 = arith.constant 0 : i32
    return %c0_i32, %c0_i32_0 : i32, i32
  }
  func.func @transform_3(%arg0: i32) -> (i32, i32) {
    %c0_i32 = arith.constant 0 : i32
    %c0_i32_0 = arith.constant 0 : i32
    %c0_i32_1 = arith.constant 0 : i32
    return %c0_i32, %c0_i32_0 : i32, i32
  }
  func.func @transform_4(%arg0: i32) -> (i32, i32) {
    %c0_i32 = arith.constant 0 : i32
    %c0_i32_0 = arith.constant 0 : i32
    %c0_i32_1 = arith.constant 0 : i32
    return %c0_i32, %c0_i32_0 : i32, i32
  }
  func.func @transform_5(%arg0: i32) -> (i32, i32) {
    %c0_i32 = arith.constant 0 : i32
    %c0_i32_0 = arith.constant 0 : i32
    %c0_i32_1 = arith.constant 0 : i32
    return %c0_i32, %c0_i32_0 : i32, i32
  }
  func.func @transform_6(%arg0: i32) -> (i32, i32) {
    %c0_i32 = arith.constant 0 : i32
    %c0_i32_0 = arith.constant 0 : i32
    %c0_i32_1 = arith.constant 0 : i32
    return %c0_i32, %c0_i32_0 : i32, i32
  }
  func.func @transform_7(%arg0: i32) -> (i32, i32) {
    %c0_i32 = arith.constant 0 : i32
    %c0_i32_0 = arith.constant 0 : i32
    %c0_i32_1 = arith.constant 0 : i32
    return %c0_i32, %c0_i32_0 : i32, i32
  }
  func.func @transform_8(%arg0: i32) -> (i32, i32) {
    %c0_i32 = arith.constant 0 : i32
    %c0_i32_0 = arith.constant 0 : i32
    %c0_i32_1 = arith.constant 0 : i32
    return %c0_i32, %c0_i32_0 : i32, i32
  }
  func.func @transform_9(%arg0: i32) -> (i32, i32) {
    %c0_i32 = arith.constant 0 : i32
    %c0_i32_0 = arith.constant 0 : i32
    return %arg0, %c0_i32 : i32, i32
  }
}

</mosaic_0001>

<bundles_post_ra>
// kernel: tpu_custom_call.1
= control target key start
LH: loop header
LB: loop body
LE: loop exit
PB: predicated region body
PF: predicated region fallthrough
CT: control target
= control target key end

     0   :  { %14 = vsyncpa [#allocation3], 0  ;;  %s699_s0 = inlined_call_operand.hbm [shape: bf16[8,16], index: 0, kind: input, shape index: {}]   ;;  %s700_s1 = inlined_call_operand.hbm [shape: bf16[16,32], index: 1, kind: input, shape index: {}]   ;;  %s701_s2 = inlined_call_operand.vmem [shape: f32[1,32], index: 2, kind: input, shape index: {}]   ;;  %s702_s3 = inlined_call_operand.hbm [shape: bf16[32,32], index: 3, kind: input, shape index: {}]   ;;  %s703_s4 = inlined_call_operand.vmem [shape: f32[1,32], index: 4, kind: input, shape index: {}]   ;;  %s704_s5 = inlined_call_operand.hbm [shape: bf16[32,32], index: 5, kind: input, shape index: {}]   ;;  %s705_s6 = inlined_call_operand.vmem [shape: f32[1,32], index: 6, kind: input, shape index: {}]   ;;  %s706_s7 = inlined_call_operand.hbm [shape: bf16[32,128], index: 7, kind: input, shape index: {}]   ;;  %s707_s8 = inlined_call_operand.vmem [shape: f32[1,128], index: 8, kind: input, shape index: {}]   ;;  %s708_s9 = inlined_call_operand.hbm [shape: f32[8,128], index: 9, kind: output, shape index: {}]  }
   0x1   :  { %15 = vsyncpa [#allocation6], 0 }
   0x2   :  { %16 = vsyncpa [#allocation9], 0 }
   0x3   :  { %17 = vsyncpa [#allocation4], 0  ;;  %s590_s30 = smov [#allocation5]  }
   0x4   :  { %s33_s10 = sshll.u32 %s590_s30, 4  ;;  %s34_s10 = int_to_ptr.vmem [resolvable:$true] %s33_s10 }
   0x5   :  { %s470_s11 = scalar_lea.vmem %s34_s10, 128  ;;  %p475_p1 = scmp.lt.s32.totalorder %s34_s10, %s34_s10 }
   0x6   :  { %p471_p0 = scmp.ne.s32.totalorder %s34_s10, %s470_s11  ;;  %p476_p2 = scmp.lt.s32.totalorder %s470_s11, %s470_s11 }
   0x8   :  { %p477_p3 = por %p476_p2, %p475_p1 }
   0xa   :  { %p478_p4 = pnand %p477_p3, %p471_p0 }
   0xc   :  { %481 = shalt.err (!%p478_p4)
}
   0xd   :  { %s591_s12 = smov 64   ;;  %s592_s13 = smov 4  }
   0xe   :  { %39 = dma.hbm_to_vmem [thread:$0]  %s700_s1, 128, %s34_s10, [#allocation6], %s591_s12, %s591_s12, %s592_s13  }
   0xf   :  { %s593_s16 = smov [#allocation8]   ;;  %s594_s18 = smov [#allocation2]  }
  0x10   :  { %s61_s17 = sshll.u32 %s593_s16, 4  ;;  %s24_s19 = sshll.u32 %s594_s18, 4  ;;  %s62_s17 = int_to_ptr.vmem [resolvable:$true] %s61_s17  ;;  %s25_s19 = int_to_ptr.vmem [resolvable:$true] %s24_s19 }
  0x11   :  { %s490_s20 = scalar_lea.vmem %s62_s17, 256  ;;  %p495_p6 = scmp.lt.s32.totalorder %s62_s17, %s62_s17 }
  0x12   :  { %p491_p5 = scmp.ne.s32.totalorder %s62_s17, %s490_s20  ;;  %p496_p7 = scmp.lt.s32.totalorder %s490_s20, %s490_s20 }
  0x14   :  { %p497_p8 = por %p496_p7, %p495_p6 }
  0x16   :  { %p498_p9 = pnand %p497_p8, %p491_p5 }
  0x18   :  { %501 = shalt.err (!%p498_p9)
}
  0x19   :  { %67 = dma.hbm_to_vmem [thread:$0]  %s704_s5, 256, %s62_s17, [#allocation9], %s591_s12, %s591_s12, %s592_s13  }
  0x1a   :  { %s510_s1 = scalar_lea.vmem %s25_s19, 64  ;;  %p515_p11 = scmp.lt.s32.totalorder %s25_s19, %s25_s19 }
  0x1b   :  { %p511_p10 = scmp.ne.s32.totalorder %s25_s19, %s510_s1  ;;  %p516_p12 = scmp.lt.s32.totalorder %s510_s1, %s510_s1 }
  0x1d   :  { %p517_p13 = por %p516_p12, %p515_p11 }
  0x1f   :  { %p518_p0 = pnand %p517_p13, %p511_p10 }
  0x21   :  { %521 = shalt.err (!%p518_p0)
}
  0x22   :  { %27 = dma.hbm_to_vmem [thread:$0]  %s699_s0, 64, %s25_s19, [#allocation3]  }
  0x23   :  { %s595_s25 = smov [#allocation7]   ;;  %s596_s27 = smov [#allocation10]  }
  0x24   :  { %s47_s26 = sshll.u32 %s595_s25, 4  ;;  %s75_s28 = sshll.u32 %s596_s27, 4  ;;  %s48_s26 = int_to_ptr.vmem [resolvable:$true] %s47_s26  ;;  %s76_s28 = int_to_ptr.vmem [resolvable:$true] %s75_s28 }
  0x25   :  { %s530_s29 = scalar_lea.vmem %s48_s26, 256  ;;  %p535_p2 = scmp.lt.s32.totalorder %s48_s26, %s48_s26 }
  0x26   :  { %p531_p1 = scmp.ne.s32.totalorder %s48_s26, %s530_s29  ;;  %p536_p3 = scmp.lt.s32.totalorder %s530_s29, %s530_s29 }
  0x28   :  { %p537_p4 = por %p536_p3, %p535_p2 }
  0x2a   :  { %p538_p5 = pnand %p537_p4, %p531_p1 }
  0x2c   :  { %541 = shalt.err (!%p538_p5)
}
  0x2d   :  { %53 = dma.hbm_to_vmem [thread:$0]  %s702_s3, 256, %s48_s26, [#allocation6], %s591_s12, %s591_s12, %s592_s13  }
  0x2e   :  { %s550_s0 = scalar_lea.vmem %s76_s28, 256  ;;  %p555_p7 = scmp.lt.s32.totalorder %s76_s28, %s76_s28 }
  0x2f   :  { %p551_p6 = scmp.ne.s32.totalorder %s76_s28, %s550_s0  ;;  %p556_p8 = scmp.lt.s32.totalorder %s550_s0, %s550_s0 }
  0x31   :  { %p557_p9 = por %p556_p8, %p555_p7 }
  0x33   :  { %p558_p10 = pnand %p557_p9, %p551_p6 }
  0x35   :  { %561 = shalt.err (!%p558_p10)
}
  0x36   :  { %81 = dma.hbm_to_vmem [thread:$0]  %s706_s7, 256, %s76_s28, [#allocation9], %s591_s12, %s591_s12, %s592_s13  }
  0x37   :  { %582 = dma.done.wait [#allocation3], 64  }
  0x38   :  { %583 = vsyncadd [#allocation3], 4294967232 }
  0x39   :  { %584 = dma.done.wait [#allocation6], 384  }
  0x3a   :  { %585 = vsyncadd [#allocation6], 4294966912 }
  0x3b   :  { %586 = dma.done.wait [#allocation9], 512  }
  0x3c   :  { %587 = vsyncadd [#allocation9], 4294966784  ;;  %v597_v0 = vmov 0.0   ;;  %vm598_vm0 = vmmov 0   ;;  %v455_v1 = vld [vmem:[#allocation5] sm:$0xff]   ;;  %vm119_vm1 = vcmask 130048  }
  0x3d   :  { %415 = vmatprep.subr.bf16.mxu0 %v597_v0  ;;  %417 = vmatprep.mubr.msk.bf16.mxu0 %vm598_vm0, %v597_v0  ;;  %v104_v2 = vld [vmem:[#allocation2] sm:$0xf]  ;;  %v456_v3 = vld [vmem:[#allocation7 + $0x8] sm:$0xff]   ;;  %v457_v4 = vld [vmem:[#allocation7] sm:$0xff]   ;;  %vm189_vm3 = vcmask 261120   ;;  %s599_s16 = smov [#allocation11]  }
  0x3e   :  { %421 = vmatprep.subr.bf16.mxu1 %v597_v0  ;;  %425 = vmatprep.mubr.msk.bf16.mxu1 %vm598_vm0, %v597_v0  ;;  %v389_v5 = vld [vmem:[%s701_s2] ss:$0 sm:$0xff]  ;;  %v458_v14 = vld [vmem:[#allocation8 + $0x8] sm:$0xff]   ;;  %v460_v25 = vld [vmem:[#allocation10 + $0x8] sm:$0xff]   ;;  %s378_s17 = sshll.u32 %s599_s16, 4  ;;  %s379_s17 = int_to_ptr.vmem [resolvable:$true] %s378_s17 }
  0x3f   :  { %416 = vmatpush3.bf16.msra.mxu0 %v455_v1  ;;  %422 = vmatpush3.bf16.msra.mxu1 %v456_v3  ;;  %v459_v15 = vld [vmem:[#allocation8] sm:$0xff]   ;;  %v461_v26 = vld [vmem:[#allocation10] sm:$0xff]   ;;  %p567_p12 = scmp.lt.s32.totalorder %s379_s17, %s379_s17 }
  0x40   :  { %429 = vmatprep.subr.bf16.mxu0 %v597_v0  ;;  %423 = vmatprep.subr.bf16.mxu1 %v597_v0  ;;  %v392_v16 = vld [vmem:[%s703_s4] ss:$0 sm:$0xff] }
  0x41   :  { %v396_v27 = vld [vmem:[%s705_s6] ss:$0 sm:$0xff]  ;;  %s562_s6 = scalar_lea.vmem %s379_s17, 128 }
  0x42   :  { %418 = vmatmul.mubr.msk.bf16.vlgmr.msra.gmra.mxu0 %vm119_vm1, %v104_v2  ;;  %v400_v36 = vld [vmem:[%s707_s8] ss:$0 sm:$0xff]  ;;  %p563_p11 = scmp.ne.s32.totalorder %s379_s17, %s562_s6  ;;  %p568_p13 = scmp.lt.s32.totalorder %s562_s6, %s562_s6 }
  0x43   :  { %433 = vmatprep.mubr.msk.bf16.mxu0 %vm598_vm0, %v597_v0  ;;  %424 = vmatpush3.bf16.msra.mxu1 %v457_v4 }
  0x44   :  { %437 = vmatprep.subr.bf16.mxu1 %v597_v0  ;;  %430 = vmatpush3.bf16.msra.mxu0 %v458_v14  ;;  %p569_p0 = por %p568_p13, %p567_p12 }
  0x45   :  { %431 = vmatprep.subr.bf16.mxu0 %v597_v0 }
  0x46   :  { %p570_p1 = pnand %p569_p0, %p563_p11 }
  0x48   :  { %432 = vmatpush3.bf16.msra.mxu0 %v459_v15 }
 0x102   :  { %v157_v6 = vpop.f32.mrf.mxu0 }
 0x103   :  { %v158_v7 = vadd.f32 %v389_v5, %v157_v6 }
 0x104   :  { %v419_v8 = vpop.f32.mrf.mxu0 }
 0x105   :  { %vm163_vm2 = vcmp.gt.f32.partialorder %v158_v7, 0.0  ;;  %v164_v9 = vmul.f32 0.01, %v158_v7 }
 0x106   :  { %v160_v10 = vpop.f32.mrf.mxu0 }
 0x107   :  { %v165_v11 = vsel %vm163_vm2, %v158_v7, %v164_v9 }
 0x108   :  { %v166_v12 = vpack.c.bf16 %v165_v11, %v165_v11  ;;  %v420_v13 = vpop.f32.mrf.mxu0 }
 0x10a   :  { %426 = vmatmul.mubr.msk.bf16.vlgmr.msra.gmra.mxu1 %vm189_vm3, %v166_v12 }
 0x10b   :  { %441 = vmatprep.mubr.msk.bf16.mxu1 %vm598_vm0, %v597_v0  ;;  %438 = vmatpush3.bf16.msra.mxu1 %v460_v25 }
 0x10c   :  { %439 = vmatprep.subr.bf16.mxu1 %v597_v0 }
 0x10f   :  { %440 = vmatpush3.bf16.msra.mxu1 %v461_v26 }
 0x1ca   :  { %v227_v17 = vpop.f32.mrf.mxu1 }
 0x1cb   :  { %v228_v18 = vadd.f32 %v392_v16, %v227_v17 }
 0x1cc   :  { %v427_v19 = vpop.f32.mrf.mxu1 }
 0x1cd   :  { %vm233_vm4 = vcmp.gt.f32.partialorder %v228_v18, 0.0  ;;  %v234_v20 = vmul.f32 0.01, %v228_v18 }
 0x1ce   :  { %v230_v21 = vpop.f32.mrf.mxu1 }
 0x1cf   :  { %v235_v22 = vsel %vm233_vm4, %v228_v18, %v234_v20 }
 0x1d0   :  { %v236_v23 = vpack.c.bf16 %v235_v22, %v235_v22  ;;  %v428_v24 = vpop.f32.mrf.mxu1 }
 0x1d2   :  { %434 = vmatmul.mubr.msk.bf16.vlgmr.msra.gmra.mxu0 %vm189_vm3, %v236_v23 }
 0x292   :  { %v296_v28 = vpop.f32.mrf.mxu0 }
 0x293   :  { %v297_v29 = vadd.f32 %v396_v27, %v296_v28 }
 0x294   :  { %v435_v30 = vpop.f32.mrf.mxu0 }
 0x295   :  { %vm302_vm5 = vcmp.gt.f32.partialorder %v297_v29, 0.0  ;;  %v303_v31 = vmul.f32 0.01, %v297_v29 }
 0x296   :  { %v299_v32 = vpop.f32.mrf.mxu0 }
 0x297   :  { %v304_v33 = vsel %vm302_vm5, %v297_v29, %v303_v31 }
 0x298   :  { %v305_v34 = vpack.c.bf16 %v304_v33, %v304_v33  ;;  %v436_v35 = vpop.f32.mrf.mxu0 }
 0x29a   :  { %442 = vmatmul.mubr.msk.bf16.vlgmr.msra.gmra.mxu1 %vm189_vm3, %v305_v34 }
 0x35a   :  { %v365_v37 = vpop.f32.mrf.mxu1 }
 0x35b   :  { %v366_v38 = vadd.f32 %v400_v36, %v365_v37 }
 0x35c   :  { %v443_v39 = vpop.f32.mrf.mxu1 }
 0x35d   :  { %371 = vst [vmem:[#allocation11] sm:$0xff] %v366_v38 }
 0x35e   :  { %v368_v40 = vpop.f32.mrf.mxu1 }
 0x35f   :  { %573 = shalt.err (!%p570_p1)
}
 0x360   :  { %381 = dma.vmem_to_hbm [thread:$0]  %s379_s17, 128, %s708_s9, [#allocation4]   ;;  %v444_v41 = vpop.f32.mrf.mxu1 }
 0x361   :  { %588 = dma.done.wait [#allocation4], 128  }
 0x362   :  { %589 = vsyncadd [#allocation4], 4294967168 }
 0x363   :  { %385 = vsyncpa [#allocation3], 1 }
 0x364   :  { %386 = vsyncpa [#allocation6], 1 }
 0x365   :  { %387 = vsyncpa [#allocation9], 1 }
 0x366   :  { %388 = vsyncpa [#allocation4], 1 }

</bundles_post_ra>
